<compile_context>
chip_gen: v6e
topology: v6e:2x2x1
jax: 0.10.0
libtpu: 0.0.40
codegen_flags: <defaults>
</compile_context>

<pallas_src>
import math

import jax
import jax.numpy as jnp
import numpy as np
from jax.experimental import pallas as pl
from jax.experimental.pallas import tpu as pltpu


def _round_up(v, m):
    return ((v + m - 1) // m) * m


def _linear_permute_kernel(x_ref, w_ref, b_ref, o_ref):
    """One (batch, spatial-tile) step of y[n, p, co] = sum_ci W[co,ci]*x[n,ci,p] + b[co].

    x_ref: (Cin, THW)      input tile, channels on sublanes / spatial on lanes
    w_ref: (Cout_p, Cin)   weight, rows zero-padded to a multiple of 8
    b_ref: (1, Cout_p)     bias, zero-padded to match
    o_ref: (THW, Cout)     output tile -- the module's permute(0, 2, 1) is fused here
    """
    x = x_ref[...]
    w = w_ref[...]
    cin, thw = x.shape
    cout_p = w.shape[0]
    cout = o_ref.shape[-1]

    if cin <= 8:
        # Tiny contraction: unrolled VPU broadcast-FMAs (skips MXU push/pop + K padding);
        # completely hidden under the HBM DMA (kernel is memory-bound).
        acc = jnp.zeros((cout_p, thw), jnp.float32)
        for k in range(cin):  # static unroll over channels
            acc = acc + w[:, k:k + 1].astype(jnp.float32) * x[k:k + 1, :].astype(jnp.float32)
    else:
        acc = jnp.dot(w, x, preferred_element_type=jnp.float32)  # (Cout_p, THW) on the MXU

    # Fused permute: one in-kernel XLU transpose per tile (hidden under the output DMA)
    # instead of a full extra HBM pass outside the kernel.  Bias added lane-wise after.
    y = jnp.transpose(acc, (1, 0)) + b_ref[...].astype(jnp.float32)  # (THW, Cout_p)
    if cout_p != cout:
        y = y[:, :cout]
    o_ref[...] = y.astype(o_ref.dtype)


def _vmem_budget():
    """Returns (tile budget bytes, scoped vmem limit bytes) adapted to the chip."""
    try:
        cap = int(pltpu.get_tpu_info().vmem_capacity_bytes)  # 128 MiB v5e/v6e, 64 MiB v7x
    except Exception:
        cap = 64 * 1024 * 1024  # conservative fallback (v7x-sized)
    budget = max(24 * 1024 * 1024, min(int(cap * 0.55), 72 * 1024 * 1024))
    limit = max(32 * 1024 * 1024, min(int(cap * 0.75), 96 * 1024 * 1024))
    return budget, limit


def _max_thw_for_budget(cin, cout, cout_p, w_bytes, budget_bytes):
    """Largest spatial tile (multiple of 128) whose VMEM working set fits the budget."""
    cin_s = _round_up(cin, 8)        # sublane-padded input rows
    cout_l = _round_up(cout, 128)    # lane-padded output block width
    # Per-THW bytes: double-buffered input + double-buffered output + acc/accT values.
    per_thw = 4 * (2 * cin_s + 2 * cout_l + 2 * cout_p)
    avail = budget_bytes - w_bytes - (1 << 20)
    if avail <= per_thw * 128:
        return 128
    return max(128, min(8192, (avail // per_thw) // 128 * 128))


def _choose_thw(hw_p, max_thw):
    """Largest multiple-of-128 divisor of hw_p that is <= max_thw."""
    m = hw_p // 128
    d_max = max(1, min(m, max_thw // 128))
    for d in range(d_max, 0, -1):
        if m % d == 0:
            return 128 * d
    return 128


def pallas_linear_permute(x, weight, bias):
    """x: (N, Cin, H, W) f32, weight: (Cout, Cin), bias: (Cout,).

    Returns (N, H*W, Cout): the per-pixel linear with the permute(0,2,1) fused into the
    kernel's stores (no external transpose pass).
    """
    N, Cin, H, W = x.shape
    Cout = weight.shape[0]
    HW = H * W

    x3 = x.reshape(N, Cin, HW)            # free reshape, stays channels-first
    HW_p = _round_up(HW, 128)             # lane-dense spatial; pad odd sizes
    if HW_p != HW:
        x3 = jnp.pad(x3, ((0, 0), (0, 0), (0, HW_p - HW)))

    # Pad output channels to a multiple of 8 (sublane-aligned in-kernel transpose); padded
    # rows carry zero weight/bias and are sliced off inside the kernel before the store.
    Cout_p = max(8, _round_up(Cout, 8))
    w_p = weight if Cout_p == Cout else jnp.pad(weight, ((0, Cout_p - Cout), (0, 0)))
    b_p = bias.reshape(1, Cout)
    if Cout_p != Cout:
        b_p = jnp.pad(b_p, ((0, 0), (0, Cout_p - Cout)))

    # Grid-invariant weight: single-buffer it only when it is big enough to matter.
    w_footprint = _round_up(Cout_p, 8) * _round_up(Cin, 128) * 4
    single_buffer_w = w_footprint >= (1 << 20)
    w_bytes = (1 if single_buffer_w else 2) * w_footprint

    budget, vmem_limit = _vmem_budget()
    max_thw = _max_thw_for_budget(Cin, Cout, Cout_p, w_bytes, budget)
    if N == 1 and HW_p > 128:
        # Keep >= 2 grid steps so both TensorCores get work on megacore parts (v7x).
        max_thw = min(max_thw, HW_p // 2)
    THW = _choose_thw(HW_p, max_thw)
    grid = (N, HW_p // THW)

    flops = 2 * N * HW * Cin * Cout
    bytes_accessed = 4 * (N * Cin * HW_p + N * HW_p * Cout + Cout_p * Cin + Cout_p)

    if single_buffer_w:
        w_spec = pl.BlockSpec((Cout_p, Cin), lambda n, j: (0, 0),
                              pipeline_mode=pl.Buffered(1))
    else:
        w_spec = pl.BlockSpec((Cout_p, Cin), lambda n, j: (0, 0))

    out = pl.pallas_call(
        _linear_permute_kernel,
        out_shape=jax.ShapeDtypeStruct((N, HW_p, Cout), jnp.float32),
        grid=grid,
        in_specs=[
            # Lane-dense input tile; batch dim squeezed out of the kernel view.
            pl.BlockSpec((None, Cin, THW), lambda n, j: (n, 0, j)),
            w_spec,
            pl.BlockSpec((1, Cout_p), lambda n, j: (0, 0)),
        ],
        # Permuted-layout output tile (spatial, channels).  The block covers the full last
        # dim, so each block's HBM writeback is one contiguous chunk.
        out_specs=pl.BlockSpec((None, THW, Cout), lambda n, j: (n, j, 0)),
        compiler_params=pltpu.CompilerParams(
            dimension_semantics=("parallel", "parallel"),
            vmem_limit_bytes=vmem_limit,
        ),
        cost_estimate=pl.CostEstimate(
            flops=flops, transcendentals=0, bytes_accessed=bytes_accessed),
    )(x3, w_p, b_p)

    if HW_p != HW:
        out = out[:, :HW, :]
    return out


def model_forward(x, weight, bias):
    """Matches Model.forward: conv2d(x, linear.weight, linear.bias) then permute(0, 2, 1).

    Returns (N, H*W, Cout).
    """
    # TODO(synk): the exact 4-D permute(0,2,1) has no valid PyTorch meaning (the module is
    #             ill-formed); the flattened-spatial interpretation is used, and the permute
    #             itself is fused into the Pallas kernel's stores.
    return pallas_linear_permute(x, weight, bias)


if __name__ == "__main__":
    key = jax.random.PRNGKey(0)
    k_x, k_w, k_b = jax.random.split(key, 3)

    # Small shapes consistent with the module's per-pixel linear over channels.
    N, Cin, H, W = 2, 4, 16, 16
    Cout = 4

    x = jax.random.normal(k_x, (N, Cin, H, W), dtype=jnp.float32)
    # torch.nn.Linear init: uniform(-1/sqrt(in), 1/sqrt(in))
    bound = 1.0 / math.sqrt(Cin)
    weight = jax.random.uniform(k_w, (Cout, Cin), jnp.float32, -bound, bound)
    bias = jax.random.uniform(k_b, (Cout,), jnp.float32, -bound, bound)

    out = jax.block_until_ready(model_forward(x, weight, bias))

    # Pure-JAX reference: 1x1 conv == channel-dim einsum, then flatten + permute.
    y_ref = jnp.einsum("nchw,oc->nohw", x, weight) + bias[None, :, None, None]
    ref = jnp.transpose(y_ref.reshape(N, Cout, H * W), (0, 2, 1))
    np.testing.assert_allclose(np.asarray(out), np.asarray(ref), rtol=1e-5, atol=1e-5)
    assert out.shape == (N, H * W, Cout)

    # Robustness check: odd spatial size (padding path), Cout not a multiple of 8, N == 1.
    N2, C2, H2, W2, Co2 = 1, 3, 6, 6, 5
    x2 = jax.random.normal(k_x, (N2, C2, H2, W2), dtype=jnp.float32)
    w2 = jax.random.uniform(k_w, (Co2, C2), jnp.float32, -1.0, 1.0)
    b2 = jax.random.uniform(k_b, (Co2,), jnp.float32, -1.0, 1.0)
    out2 = jax.block_until_ready(model_forward(x2, w2, b2))
    y2 = jnp.einsum("nchw,oc->nohw", x2, w2) + b2[None, :, None, None]
    ref2 = jnp.transpose(y2.reshape(N2, Co2, H2 * W2), (0, 2, 1))
    np.testing.assert_allclose(np.asarray(out2), np.asarray(ref2), rtol=1e-5, atol=1e-5)
    assert out2.shape == (N2, H2 * W2, Co2)

    print("KERNEL_OK")
</pallas_src>

<mosaic_0001>
module attributes {stable_mosaic.version = 11 : i64} {
  func.func @_linear_permute_kernel(%arg0: i32, %arg1: i32, %arg2: memref<1x4x256xf32, #tpu.memory_space<vmem>>, %arg3: memref<8x4xf32, #tpu.memory_space<vmem>>, %arg4: memref<1x8xf32, #tpu.memory_space<vmem>>, %arg5: memref<1x256x4xf32, #tpu.memory_space<vmem>>) attributes {dimension_semantics = [#tpu.dimension_semantics<parallel>, #tpu.dimension_semantics<parallel>], iteration_bounds = array<i64: 2, 1>, scalar_prefetch = 0 : i64, scratch_operands = 0 : i64, tpu.core_type = #tpu.core_type<tc>, window_params = [{transform_indices = @transform_0, window_bounds = array<i64: 1, 4, 256>}, {pipeline_mode = #tpu.pipeline_mode<synchronous>, transform_indices = @transform_1, window_bounds = array<i64: 8, 4>}, {pipeline_mode = #tpu.pipeline_mode<synchronous>, transform_indices = @transform_2, window_bounds = array<i64: 1, 8>}, {transform_indices = @transform_3, window_bounds = array<i64: 1, 256, 4>}]} {
    %c0 = arith.constant 0 : index
    %c0_0 = arith.constant 0 : index
    %c0_1 = arith.constant 0 : index
    %0 = vector.load %arg2[%c0, %c0_0, %c0_1] : memref<1x4x256xf32, #tpu.memory_space<vmem>>, vector<1x4x256xf32>
    %1 = vector.shape_cast %0 : vector<1x4x256xf32> to vector<4x256xf32>
    %c0_2 = arith.constant 0 : index
    %c0_3 = arith.constant 0 : index
    %2 = vector.load %arg3[%c0_2, %c0_3] : memref<8x4xf32, #tpu.memory_space<vmem>>, vector<8x4xf32>
    %cst = arith.constant 0.000000e+00 : f32
    %3 = vector.broadcast %cst : f32 to vector<8x256xf32>
    %4 = vector.extract_strided_slice %2 {offsets = [0, 0], sizes = [8, 1], strides = [1, 1]} : vector<8x4xf32> to vector<8x1xf32>
    %5 = vector.extract_strided_slice %1 {offsets = [0, 0], sizes = [1, 256], strides = [1, 1]} : vector<4x256xf32> to vector<1x256xf32>
    %6 = vector.broadcast %4 : vector<8x1xf32> to vector<8x256xf32>
    %7 = vector.broadcast %5 : vector<1x256xf32> to vector<8x256xf32>
    %8 = arith.mulf %6, %7 : vector<8x256xf32>
    %9 = arith.addf %3, %8 : vector<8x256xf32>
    %10 = vector.extract_strided_slice %2 {offsets = [0, 1], sizes = [8, 1], strides = [1, 1]} : vector<8x4xf32> to vector<8x1xf32>
    %11 = vector.extract_strided_slice %1 {offsets = [1, 0], sizes = [1, 256], strides = [1, 1]} : vector<4x256xf32> to vector<1x256xf32>
    %12 = vector.broadcast %10 : vector<8x1xf32> to vector<8x256xf32>
    %13 = vector.broadcast %11 : vector<1x256xf32> to vector<8x256xf32>
    %14 = arith.mulf %12, %13 : vector<8x256xf32>
    %15 = arith.addf %9, %14 : vector<8x256xf32>
    %16 = vector.extract_strided_slice %2 {offsets = [0, 2], sizes = [8, 1], strides = [1, 1]} : vector<8x4xf32> to vector<8x1xf32>
    %17 = vector.extract_strided_slice %1 {offsets = [2, 0], sizes = [1, 256], strides = [1, 1]} : vector<4x256xf32> to vector<1x256xf32>
    %18 = vector.broadcast %16 : vector<8x1xf32> to vector<8x256xf32>
    %19 = vector.broadcast %17 : vector<1x256xf32> to vector<8x256xf32>
    %20 = arith.mulf %18, %19 : vector<8x256xf32>
    %21 = arith.addf %15, %20 : vector<8x256xf32>
    %22 = vector.extract_strided_slice %2 {offsets = [0, 3], sizes = [8, 1], strides = [1, 1]} : vector<8x4xf32> to vector<8x1xf32>
    %23 = vector.extract_strided_slice %1 {offsets = [3, 0], sizes = [1, 256], strides = [1, 1]} : vector<4x256xf32> to vector<1x256xf32>
    %24 = vector.broadcast %22 : vector<8x1xf32> to vector<8x256xf32>
    %25 = vector.broadcast %23 : vector<1x256xf32> to vector<8x256xf32>
    %26 = arith.mulf %24, %25 : vector<8x256xf32>
    %27 = arith.addf %21, %26 : vector<8x256xf32>
    %28 = tpu.transpose %27, [1, 0] : vector<8x256xf32> -> vector<256x8xf32>
    %c0_4 = arith.constant 0 : index
    %c0_5 = arith.constant 0 : index
    %29 = vector.load %arg4[%c0_4, %c0_5] : memref<1x8xf32, #tpu.memory_space<vmem>>, vector<1x8xf32>
    %30 = vector.broadcast %29 : vector<1x8xf32> to vector<256x8xf32>
    %31 = arith.addf %28, %30 : vector<256x8xf32>
    %32 = vector.extract_strided_slice %31 {offsets = [0, 0], sizes = [256, 4], strides = [1, 1]} : vector<256x8xf32> to vector<256x4xf32>
    %c0_6 = arith.constant 0 : index
    %c0_7 = arith.constant 0 : index
    %c0_8 = arith.constant 0 : index
    %33 = vector.load %arg5[%c0_6, %c0_7, %c0_8] : memref<1x256x4xf32, #tpu.memory_space<vmem>>, vector<1x256x4xf32>
    %34 = vector.shape_cast %33 : vector<1x256x4xf32> to vector<256x4xf32>
    %35 = vector.shape_cast %32 : vector<256x4xf32> to vector<1x256x4xf32>
    tpu.vector_store %arg5[%c0_6, %c0_7, %c0_8], %35 {strides = array<i32>} : memref<1x256x4xf32, #tpu.memory_space<vmem>>, vector<1x256x4xf32>,
    return
  }
  func.func @transform_0(%arg0: i32, %arg1: i32) -> (i32, i32, i32) {
    %c0_i32 = arith.constant 0 : i32
    %c0_i32_0 = arith.constant 0 : i32
    return %arg0, %c0_i32, %arg1 : i32, i32, i32
  }
  func.func @transform_1(%arg0: i32, %arg1: i32) -> (i32, i32) {
    %c0_i32 = arith.constant 0 : i32
    %c0_i32_0 = arith.constant 0 : i32
    %c0_i32_1 = arith.constant 0 : i32
    return %c0_i32, %c0_i32_0 : i32, i32
  }
  func.func @transform_2(%arg0: i32, %arg1: i32) -> (i32, i32) {
    %c0_i32 = arith.constant 0 : i32
    %c0_i32_0 = arith.constant 0 : i32
    %c0_i32_1 = arith.constant 0 : i32
    return %c0_i32, %c0_i32_0 : i32, i32
  }
  func.func @transform_3(%arg0: i32, %arg1: i32) -> (i32, i32, i32) {
    %c0_i32 = arith.constant 0 : i32
    %c0_i32_0 = arith.constant 0 : i32
    return %arg0, %arg1, %c0_i32 : i32, i32, i32
  }
}

</mosaic_0001>

<bundles_post_ra>
// kernel: tpu_custom_call.1
= control target key start
LH: loop header
LB: loop body
LE: loop exit
PB: predicated region body
PF: predicated region fallthrough
CT: control target
= control target key end

     0   :  { %8 = vsyncpa [#allocation3], 0  ;;  %s948_s0 = inlined_call_operand.hbm [shape: f32[2,4,256], index: 0, kind: input, shape index: {}]   ;;  %s949_s1 = inlined_call_operand.vmem [shape: f32[8,4], index: 1, kind: input, shape index: {}]   ;;  %s950_s2 = inlined_call_operand.vmem [shape: f32[1,8], index: 2, kind: input, shape index: {}]   ;;  %s951_s3 = inlined_call_operand.vmem [shape: f32[2,256,4], index: 3, kind: output, shape index: {}]  }
   0x1   :  { %10 = vsyncpa [#allocation3 + $0x1], 0  ;;  %s742_s12 = smov 0   ;;  %s744_s13 = smov 0  }
   0x2   :  { %s746_s14 = smov 0   ;;  %s748_s15 = smov 0  }
   0x3   :  { %s750_s16 = smov 0   ;;  %s752_s17 = smov 0  }
   0x4 LB: > { %s556_s18 = sadd.s32 4294967295, %s715_s17   ;;  %s28_s19 = sadd.s32 1, %s711_s16  ;;  %s715_s17 = sphi %s752_s17, %s16_s17   ;;  %s711_s16 = sphi %s750_s16, %s959_s16   ;;  %s707_s15 = sphi %s748_s15, %s958_s15   ;;  %s703_s14 = sphi %s746_s14, %s957_s14   ;;  %s699_s13 = sphi %s744_s13, %s956_s13   ;;  %s695_s12 = sphi %s742_s12, %s955_s12  }
   0x5   : > { %p30_p0 = scmp.ge.s32.totalorder %s28_s19, 2  ;;  %s37_s20 = sadd.s32 1, %s703_s14 }
   0x6   : > { %p44_p1 = scmp.ne.s32.totalorder %s703_s14, %s699_s13  ;;  %p45_p2 = scmp.eq.s32.totalorder %s715_s17, 0 }
   0x7   : > { %s961_s19 = smov (%p30_p0, %s28_s19), 0  ;;  %p50_p4 = scmp.ne.s32.totalorder %s699_s13, %s695_s12 }
   0x8   : > { %p778_p3 = por %p45_p2, %p44_p1  ;;  %s32_s22 = ssub.s32 %s711_s16, %s961_s19 }
   0x9   : > { %p51_p5 = scmp.eq.s32.totalorder %s556_s18, 0  ;;  %p35_p6 = scmp.eq.s32.totalorder %s32_s22, 0 }
   0xa   : > { %p578_p8 = scmp.lt.s32.totalorder %s715_s17, 2  ;;  %s150_s25 = sand.u32 1, %s703_s14  }
   0xb   : > { %p785_p7 = por %p51_p5, %p50_p4  ;;  %s570_s26 = sshll.u32 %s711_s16, 7 }
   0xc   : > { %s791_s24 = scalar_select %p35_p6, %s703_s14, %s37_s20  }
   0xd   : > { %s560_s27 = sshll.u32 %s150_s25, 3  ;;  %s162_s30 = scalar_lea.hbm %s948_s0, %s570_s26 }
   0xe   : > { %s154_s4 = scalar_lea.vmem [#allocation2], %s560_s27  ;;  %p800_p9 = pnand %p578_p8, %p778_p3 }
   0xf   : > { %s164_s5 = sshll.u32 %s154_s4, 4  ;;  %p563_p10 = scmp.ge.s32.totalorder %s715_s17, 1  ;;  %s165_s5 = int_to_ptr.vmem [resolvable:$true] %s164_s5 }
  0x10   : > { %p169_p11 = scmp.lt.s32.totalorder %s715_s17, 3  ;;  %s151_s7 = scalar_lea.sflag [#allocation3], %s150_s25 }
  0x11   : > { %p639_p12 = pneg %p800_p9  ;;  %s650_s8 = scalar_lea.vmem %s165_s5, 128 }
  0x12   : > { %p651_p13 = scmp.ne.s32.totalorder %s165_s5, %s650_s8  ;;  %s717_s9 = smov [#allocation2]  }
  0x13   : > { %s655_s10 = sshll.u32 %s717_s9, 4  ;;  %s656_s10 = int_to_ptr.vmem [resolvable:$false] %s655_s10 }
  0x14   : > { %p653_p0 = pnand %p651_p13, %p639_p12  ;;  %s657_s11 = scalar_lea.vmem %s656_s10, 256 }
  0x15   : > { %p658_p2 = scmp.lt.s32.totalorder %s165_s5, %s656_s10  ;;  %p659_p3 = scmp.lt.s32.totalorder %s657_s11, %s650_s8 }
  0x16   : > { %p654_p1 = pneg %p653_p0 }
  0x17   : > { %p660_p4 = por %p659_p3, %p658_p2 }
  0x19   : > { %p661_p5 = pnand %p660_p4, %p654_p1 }
  0x1b   : > { %664 = shalt.err (!%p661_p5)
}
  0x1c   : > { %577 = dma.hbm_to_vmem [thread:$0]  (!%p800_p9), %s162_s30, 128, %s165_s5, %s151_s7  }
  0x1d   : > { %p170_p6 = pnand %p563_p10, %p169_p11 }
  0x1e   : > { %s175_s12 = sand.u32 (!%p170_p6), 1, %s699_s13  }
  0x1f   : > { %173 = sbr.rel (%p170_p6) target bundleno = 364 (0x16c), region = 32  ;;  %s564_s18 = sshll.u32 (!%p170_p6), %s175_s12, 3 }
  0x20   : > { %s176_s20 = scalar_lea.sflag (!%p170_p6), [#allocation3], %s175_s12  ;;  %s179_s21 = scalar_lea.vmem (!%p170_p6), [#allocation2], %s564_s18 }
  0x24   : > { %690 = dma.done.wait (%p785_p7), %s176_s20, 128  }
  0x25   : > { %692 = vsyncadd (%p785_p7), %s176_s20, 4294967168  ;;  %v718_v0 = vmov 0   ;;  %v719_v1 = vmov 2   ;;  %v218_v2 = vld [vmem:[%s949_s1] sm:$0xff]  ;;  %v720_v3 = vmov 1   ;;  %v721_v4 = vmov 3  }
  0x26   : > { %632 = vset.pattern.permute.xlu0 %v718_v0  ;;  %634 = vset.pattern.permute.xlu1 %v719_v1  ;;  %v225_v5 = vlaneseq  ;;  %v217_v11 = vld [vmem:[%s179_s21] sm:$0xff]  ;;  %p208_p7 = scmp.lt.s32.totalorder %s707_s15, 1  ;;  %vm428_vm0 = vcmask 31744  }
  0x27   : > { %221 = vperm.xlu0 %632, %v218_v2   ;;  %274 = vperm.xlu1 %634, %v218_v2   ;;  %v827_v50 = vld [vmem:[%s950_s2] ss:$0 sm:$0xff] }
  0x28   : > { %v226_v6 = vshrl.u32 %v225_v5, 7  ;;  %s963_s15 = smov (!%p208_p7, %s707_s15), 1 }
  0x29   : > { %s571_s23 = sshll.u32 %s963_s15, 8 }
  0x2a   : > { %v227_v7 = vsub.s32 0, %v226_v6  ;;  %v231_v8 = vsub.s32 4, %v226_v6  ;;  %v253_v9 = vsub.s32 1, %v226_v6  ;;  %v257_v10 = vsub.s32 5, %v226_v6  ;;  %s832_s30 = scalar_lea.vmem %s951_s3, %s571_s23 }
  0x2b   : > { %633 = vset.pattern.permute.xlu0 %v720_v3  ;;  %635 = vset.pattern.permute.xlu1 %v721_v4  ;;  %v279_v12 = vsub.s32 2, %v226_v6  ;;  %v283_v13 = vsub.s32 6, %v226_v6  ;;  %v305_v14 = vsub.s32 3, %v226_v6  ;;  %v309_v15 = vsub.s32 7, %v226_v6 }
  0x2c   : > { %248 = vperm.xlu0 %633, %v218_v2   ;;  %300 = vperm.xlu1 %635, %v218_v2   ;;  %v228_v16 = vrot.slane %v217_v11, %v227_v7  ;;  %v232_v17 = vrot.slane %v217_v11, %v231_v8  ;;  %v254_v18 = vrot.slane %v217_v11, %v253_v9 }
  0x2d   : > { %v258_v19 = vrot.slane %v217_v11, %v257_v10  ;;  %v280_v20 = vrot.slane %v217_v11, %v279_v12  ;;  %v284_v21 = vrot.slane %v217_v11, %v283_v13  ;;  %v306_v24 = vrot.slane %v217_v11, %v305_v14 }
  0x2e   : > { %v310_v25 = vrot.slane %v217_v11, %v309_v15  ;;  %v238_v26 = vrot.slane %v228_v16, %v227_v7  ;;  %v242_v27 = vrot.slane %v232_v17, %v227_v7  ;;  %v264_v28 = vrot.slane %v254_v18, %v253_v9 }
  0x2f   : > { %v268_v29 = vrot.slane %v258_v19, %v253_v9  ;;  %v290_v30 = vrot.slane %v280_v20, %v279_v12  ;;  %v294_v31 = vrot.slane %v284_v21, %v279_v12  ;;  %v316_v32 = vrot.slane %v306_v24, %v305_v14 }
  0x30   : > { %v320_v33 = vrot.slane %v310_v25, %v305_v14 }
  0xa2   : > { %v222_v22 = vpop.permute.xlu0 %221  ;;  %v275_v23 = vpop.permute.xlu1 %274 }
  0xa3   : > { %v243_v36 = vmul.f32 %v238_v26, %v222_v22  ;;  %v244_v37 = vmul.f32 %v242_v27, %v222_v22  ;;  %v295_v40 = vmul.f32 %v290_v30, %v275_v23  ;;  %v296_v41 = vmul.f32 %v294_v31, %v275_v23 }
  0xa7   : > { %v249_v34 = vpop.permute.xlu0 %248  ;;  %v301_v35 = vpop.permute.xlu1 %300 }
  0xa8   : > { %v269_v38 = vmul.f32 %v264_v28, %v249_v34  ;;  %v270_v39 = vmul.f32 %v268_v29, %v249_v34  ;;  %v321_v44 = vmul.f32 %v316_v32, %v301_v35  ;;  %v322_v45 = vmul.f32 %v320_v33, %v301_v35 }
  0xaa   : > { %v271_v42 = vadd.f32 %v269_v38, %v243_v36  ;;  %v272_v43 = vadd.f32 %v270_v39, %v244_v37 }
  0xac   : > { %v297_v46 = vadd.f32 %v295_v40, %v271_v42  ;;  %v298_v47 = vadd.f32 %v296_v41, %v272_v43 }
  0xae   : > { %v323_v48 = vadd.f32 %v321_v44, %v297_v46  ;;  %v324_v49 = vadd.f32 %v322_v45, %v298_v47 }
  0xb0   : > { %357 = vxpose.xlu0.b32.start.end [1/1] (short) %v324_v49, 128  ;;  %325 = vxpose.xlu1.b32.start.end [1/1] (short) %v323_v48, 128 }
  0xd9   : > { %636 = vset.pattern.permute.xlu0 %v721_v4 }
 0x12c   : > { %v373_v51 = vpop.trf.xlu0  ;;  %v341_v52 = vpop.trf.xlu1 }
 0x12d   : > { %v412_v53 = vadd.f32 %v827_v50, %v373_v51  ;;  %v396_v54 = vadd.f32 %v827_v50, %v341_v52 }
 0x12f   : > { %445 = vst.msk [vmem:[%s832_s30 + $0x80] sm:$0xff] %vm428_vm0, %v412_v53  ;;  %429 = vst.msk [vmem:[%s832_s30] sm:$0xff] %vm428_vm0, %v396_v54 }
 0x130   : > { %v374_v55 = vpop.trf.xlu0  ;;  %v342_v56 = vpop.trf.xlu1 }
 0x131   : > { %v413_v57 = vadd.f32 %v827_v50, %v374_v55  ;;  %v397_v58 = vadd.f32 %v827_v50, %v342_v56 }
 0x133   : > { %446 = vst.msk [vmem:[%s832_s30 + $0x88] sm:$0xff] %vm428_vm0, %v413_v57  ;;  %430 = vst.msk [vmem:[%s832_s30 + $0x8] sm:$0xff] %vm428_vm0, %v397_v58 }
 0x134   : > { %v375_v59 = vpop.trf.xlu0  ;;  %v343_v60 = vpop.trf.xlu1 }
 0x135   : > { %v414_v61 = vadd.f32 %v827_v50, %v375_v59  ;;  %v398_v62 = vadd.f32 %v827_v50, %v343_v60 }
 0x137   : > { %447 = vst.msk [vmem:[%s832_s30 + $0x90] sm:$0xff] %vm428_vm0, %v414_v61  ;;  %431 = vst.msk [vmem:[%s832_s30 + $0x10] sm:$0xff] %vm428_vm0, %v398_v62 }
 0x138   : > { %v376_v63 = vpop.trf.xlu0  ;;  %v344_v0 = vpop.trf.xlu1 }
 0x139   : > { %v415_v1 = vadd.f32 %v827_v50, %v376_v63  ;;  %v399_v2 = vadd.f32 %v827_v50, %v344_v0 }
 0x13b   : > { %448 = vst.msk [vmem:[%s832_s30 + $0x98] sm:$0xff] %vm428_vm0, %v415_v1  ;;  %432 = vst.msk [vmem:[%s832_s30 + $0x18] sm:$0xff] %vm428_vm0, %v399_v2 }
 0x13c   : > { %v377_v3 = vpop.trf.xlu0  ;;  %v345_v4 = vpop.trf.xlu1 }
 0x13d   : > { %v416_v5 = vadd.f32 %v827_v50, %v377_v3  ;;  %v400_v6 = vadd.f32 %v827_v50, %v345_v4 }
 0x13f   : > { %449 = vst.msk [vmem:[%s832_s30 + $0xa0] sm:$0xff] %vm428_vm0, %v416_v5  ;;  %433 = vst.msk [vmem:[%s832_s30 + $0x20] sm:$0xff] %vm428_vm0, %v400_v6 }
 0x140   : > { %v378_v7 = vpop.trf.xlu0  ;;  %v346_v8 = vpop.trf.xlu1 }
 0x141   : > { %v417_v9 = vadd.f32 %v827_v50, %v378_v7  ;;  %v401_v10 = vadd.f32 %v827_v50, %v346_v8 }
 0x143   : > { %450 = vst.msk [vmem:[%s832_s30 + $0xa8] sm:$0xff] %vm428_vm0, %v417_v9  ;;  %434 = vst.msk [vmem:[%s832_s30 + $0x28] sm:$0xff] %vm428_vm0, %v401_v10 }
 0x144   : > { %v379_v11 = vpop.trf.xlu0  ;;  %v347_v12 = vpop.trf.xlu1 }
 0x145   : > { %v418_v13 = vadd.f32 %v827_v50, %v379_v11  ;;  %v402_v14 = vadd.f32 %v827_v50, %v347_v12 }
 0x147   : > { %451 = vst.msk [vmem:[%s832_s30 + $0xb0] sm:$0xff] %vm428_vm0, %v418_v13  ;;  %435 = vst.msk [vmem:[%s832_s30 + $0x30] sm:$0xff] %vm428_vm0, %v402_v14 }
 0x148   : > { %v380_v15 = vpop.trf.xlu0  ;;  %v348_v16 = vpop.trf.xlu1 }
 0x149   : > { %v419_v17 = vadd.f32 %v827_v50, %v380_v15  ;;  %v403_v18 = vadd.f32 %v827_v50, %v348_v16 }
 0x14b   : > { %452 = vst.msk [vmem:[%s832_s30 + $0xb8] sm:$0xff] %vm428_vm0, %v419_v17  ;;  %436 = vst.msk [vmem:[%s832_s30 + $0x38] sm:$0xff] %vm428_vm0, %v403_v18 }
 0x14c   : > { %v381_v19 = vpop.trf.xlu0  ;;  %v349_v20 = vpop.trf.xlu1 }
 0x14d   : > { %v420_v21 = vadd.f32 %v827_v50, %v381_v19  ;;  %v404_v22 = vadd.f32 %v827_v50, %v349_v20 }
 0x14f   : > { %453 = vst.msk [vmem:[%s832_s30 + $0xc0] sm:$0xff] %vm428_vm0, %v420_v21  ;;  %437 = vst.msk [vmem:[%s832_s30 + $0x40] sm:$0xff] %vm428_vm0, %v404_v22 }
 0x150   : > { %v382_v23 = vpop.trf.xlu0  ;;  %v350_v24 = vpop.trf.xlu1 }
 0x151   : > { %v421_v25 = vadd.f32 %v827_v50, %v382_v23  ;;  %v405_v26 = vadd.f32 %v827_v50, %v350_v24 }
 0x153   : > { %454 = vst.msk [vmem:[%s832_s30 + $0xc8] sm:$0xff] %vm428_vm0, %v421_v25  ;;  %438 = vst.msk [vmem:[%s832_s30 + $0x48] sm:$0xff] %vm428_vm0, %v405_v26 }
 0x154   : > { %v383_v27 = vpop.trf.xlu0  ;;  %v351_v28 = vpop.trf.xlu1 }
 0x155   : > { %v422_v29 = vadd.f32 %v827_v50, %v383_v27  ;;  %v406_v30 = vadd.f32 %v827_v50, %v351_v28 }
 0x157   : > { %455 = vst.msk [vmem:[%s832_s30 + $0xd0] sm:$0xff] %vm428_vm0, %v422_v29  ;;  %439 = vst.msk [vmem:[%s832_s30 + $0x50] sm:$0xff] %vm428_vm0, %v406_v30 }
 0x158   : > { %v384_v31 = vpop.trf.xlu0  ;;  %v352_v32 = vpop.trf.xlu1 }
 0x159   : > { %v423_v33 = vadd.f32 %v827_v50, %v384_v31  ;;  %v407_v34 = vadd.f32 %v827_v50, %v352_v32 }
 0x15b   : > { %456 = vst.msk [vmem:[%s832_s30 + $0xd8] sm:$0xff] %vm428_vm0, %v423_v33  ;;  %440 = vst.msk [vmem:[%s832_s30 + $0x58] sm:$0xff] %vm428_vm0, %v407_v34 }
 0x15c   : > { %v385_v35 = vpop.trf.xlu0  ;;  %v353_v36 = vpop.trf.xlu1 }
 0x15d   : > { %v424_v37 = vadd.f32 %v827_v50, %v385_v35  ;;  %v408_v38 = vadd.f32 %v827_v50, %v353_v36 }
 0x15f   : > { %457 = vst.msk [vmem:[%s832_s30 + $0xe0] sm:$0xff] %vm428_vm0, %v424_v37  ;;  %441 = vst.msk [vmem:[%s832_s30 + $0x60] sm:$0xff] %vm428_vm0, %v408_v38 }
 0x160   : > { %v386_v39 = vpop.trf.xlu0  ;;  %v354_v40 = vpop.trf.xlu1 }
 0x161   : > { %v425_v41 = vadd.f32 %v827_v50, %v386_v39  ;;  %v409_v42 = vadd.f32 %v827_v50, %v354_v40 }
 0x163   : > { %458 = vst.msk [vmem:[%s832_s30 + $0xe8] sm:$0xff] %vm428_vm0, %v425_v41  ;;  %442 = vst.msk [vmem:[%s832_s30 + $0x68] sm:$0xff] %vm428_vm0, %v409_v42 }
 0x164   : > { %v387_v43 = vpop.trf.xlu0  ;;  %v355_v44 = vpop.trf.xlu1 }
 0x165   : > { %v426_v45 = vadd.f32 %v827_v50, %v387_v43  ;;  %v410_v46 = vadd.f32 %v827_v50, %v355_v44 }
 0x167   : > { %459 = vst.msk [vmem:[%s832_s30 + $0xf0] sm:$0xff] %vm428_vm0, %v426_v45  ;;  %443 = vst.msk [vmem:[%s832_s30 + $0x70] sm:$0xff] %vm428_vm0, %v410_v46 }
 0x168   : > { %v388_v47 = vpop.trf.xlu0  ;;  %v356_v48 = vpop.trf.xlu1 }
 0x169   : > { %v427_v49 = vadd.f32 %v827_v50, %v388_v47  ;;  %v411_v51 = vadd.f32 %v827_v50, %v356_v48 }
 0x16b   : > { %460 = vst.msk [vmem:[%s832_s30 + $0xf8] sm:$0xff] %vm428_vm0, %v427_v49  ;;  %444 = vst.msk [vmem:[%s832_s30 + $0x78] sm:$0xff] %vm428_vm0, %v411_v51 }
 0x16c PF: > { %s16_s17 = sadd.s32 1, %s715_s17   ;;  %s955_s12 = smov %s699_s13 }
 0x16d   : > { %p13_p8 = scmp.ge.s32.totalorder %s16_s17, 4   ;;  %s956_s13 = smov %s703_s14 }
 0x16e   : > { %s957_s14 = smov %s791_s24  ;;  %s958_s15 = smov %s711_s16 }
 0x16f   : > { %s959_s16 = smov %s961_s19  ;;  %15 = sbr.rel (!%p13_p8) target bundleno = 4 (0x4), region = 72 }
 0x174   :  { %491 = vsyncpa [#allocation3], 1 }
 0x175   :  { %493 = vsyncpa [#allocation3 + $0x1], 1 }

</bundles_post_ra>
